<compile_context>
chip_gen: v5e
topology: v5e:2x2
jax: 0.10.0
libtpu: 0.0.40
codegen_flags: <defaults>
</compile_context>

<pallas_src>
import jax
import jax.numpy as jnp
from jax import lax
from jax.experimental import pallas as pl
from jax.experimental.pallas import tpu as pltpu


def feat_res_kernel(x_ref, w_ref, b_ref, o_ref):
    """One row-tile of Feat_Res_Net.

    x_ref : (tn, W)     activation row tile
    w_ref : (L, W, W)   VMEM-resident, pre-transposed weights (block l does h @ w_ref[l])
    b_ref : (L, 1, W)   VMEM-resident biases
    o_ref : (tn, W)     output row tile
    """
    L = w_ref.shape[0]
    h0 = x_ref[...].astype(jnp.float32)

    def body(l, h):
        h = jnp.maximum(h, 0.0)                       # ReLU (f32 VPU)
        w = w_ref[l]                                  # (W, W), already == weight.T
        hm = h.astype(w.dtype)                        # MXU operand dtype (bf16 path if bf16 weights)
        return (h
                + jnp.dot(hm, w, preferred_element_type=jnp.float32)
                + b_ref[l].astype(jnp.float32))       # residual + bias, kept in f32

    # L is small & static: fully unrolled layer loop inside one grid step.
    h = lax.fori_loop(0, L, body, h0, unroll=True)
    o_ref[...] = h.astype(o_ref.dtype)


def prepare_feat_res_params(weights, biases):
    """One-time parameter prep, hoisted out of the per-call forward path.

    weights: (L, W, W) in PyTorch (out_features, in_features) layout.
    biases : (L, W) or (L, 1, W).
    Returns (weights_t, biases3) with weights_t[l] == weights[l].T so the kernel
    computes h @ w with no per-layer in-kernel transpose.
    """
    if biases.ndim == 2:
        biases = biases[:, None, :]
    return jnp.transpose(weights, (0, 2, 1)), biases


def _pick_row_block(N, max_row_block):
    """Largest power-of-two-ish tile that divides N, keeps >=2 tiles once N>=16
    (so v7x megacore shards rows across both TCs) and stays <= max_row_block.
    max_row_block=256 is the safe default for vreg pressure; sweep toward 512
    on single-TC v5e/v6e for large N (HBM-roofline sweet spot)."""
    if N < 16:
        return N
    best = None
    rb = 8
    cap = min(max_row_block, N // 2)
    while rb <= cap:
        if N % rb == 0:
            best = rb
        rb *= 2
    return best if best is not None else N


def feat_res_net(x, weights_t, biases, *, row_block=None, max_row_block=256):
    """Forward pass of Feat_Res_Net.

    x         : (N, W) activations.
    weights_t : (L, W, W) PRE-TRANSPOSED weights (see prepare_feat_res_params).
    biases    : (L, 1, W) or (L, W).
    """
    N, W = x.shape
    L = weights_t.shape[0]
    if biases.ndim == 2:
        biases = biases[:, None, :]

    if row_block is None:
        row_block = _pick_row_block(N, max_row_block)
    # TODO(synk): ragged N must be padded by the caller (pad rows are independent/harmless).
    assert N % row_block == 0, "N must be divisible by row_block"
    grid = (N // row_block,)

    # VMEM budget: single-buffered params + double-buffered activation/output tiles.
    x_item = jnp.dtype(x.dtype).itemsize
    vmem_bytes = (L * W * W * jnp.dtype(weights_t.dtype).itemsize
                  + L * W * jnp.dtype(biases.dtype).itemsize
                  + 4 * row_block * W * x_item)
    vmem_limit = int(min(max(2 * vmem_bytes, 16 << 20), 64 << 20))

    def build(single_buffer_params):
        param_kw = {"pipeline_mode": pl.Buffered(1)} if single_buffer_params else {}
        return pl.pallas_call(
            feat_res_kernel,
            out_shape=jax.ShapeDtypeStruct((N, W), x.dtype),
            grid_spec=pltpu.PrefetchScalarGridSpec(
                num_scalar_prefetch=0,
                grid=grid,
                in_specs=[
                    # Activations: per-row-tile, default double-buffered pipeline.
                    pl.BlockSpec((row_block, W), lambda i: (i, 0)),
                    # Full weight stack, VMEM-resident; constant index -> single buffer.
                    pl.BlockSpec((L, W, W), lambda i: (0, 0, 0), **param_kw),
                    # Full bias stack, VMEM-resident; constant index -> single buffer.
                    pl.BlockSpec((L, 1, W), lambda i: (0, 0, 0), **param_kw),
                ],
                out_specs=pl.BlockSpec((row_block, W), lambda i: (i, 0)),
            ),
            compiler_params=pltpu.CompilerParams(
                # Row tiles are independent -> v7x megacore shards them across TCs.
                dimension_semantics=("parallel",),
                vmem_limit_bytes=vmem_limit,
            ),
        )

    try:
        return build(True)(x, weights_t, biases)
    except Exception:
        # Fallback: default (double-buffered) param pipeline if Buffered(1) is
        # unsupported by the installed jax version.
        return build(False)(x, weights_t, biases)


def feat_res_net_ref(x, weights, biases):
    """Pure-JAX reference mirroring the PyTorch forward (original weight layout)."""
    if biases.ndim == 2:
        biases = biases[:, None, :]
    h = x.astype(jnp.float32)
    for l in range(weights.shape[0]):
        h = jnp.maximum(h, 0.0)
        h = h + h @ weights[l].T + biases[l]
    return h


if __name__ == "__main__":
    # Module hyperparameters: Feat_Res_Net(W, D) -> (D - 1) Linear_Res blocks.
    W = 128   # hidden width (lane-aligned)
    D = 4     # depth -> L = D - 1 = 3 blocks
    N = 8     # batch rows
    L = D - 1

    key = jax.random.PRNGKey(0)
    kx, kw, kb = jax.random.split(key, 3)

    x = jax.random.normal(kx, (N, W), dtype=jnp.float32)
    # Deterministic synthetic parameters (small scale to keep values bounded).
    weights = jax.random.normal(kw, (L, W, W), dtype=jnp.float32) * 0.05
    biases = jax.random.normal(kb, (L, W), dtype=jnp.float32) * 0.05

    # One-time param prep (hoisted weight transpose).
    weights_t, biases3 = prepare_feat_res_params(weights, biases)

    out = feat_res_net(x, weights_t, biases3)
    out = jax.block_until_ready(out)

    ref = feat_res_net_ref(x, weights, biases)
    assert out.shape == (N, W)
    assert jnp.allclose(out, ref, atol=1e-4, rtol=1e-4), "mismatch vs reference"

    print("KERNEL_OK")
</pallas_src>

<mosaic_0001>
module attributes {stable_mosaic.version = 11 : i64} {
  func.func @feat_res_kernel(%arg0: i32, %arg1: memref<8x128xf32, #tpu.memory_space<vmem>>, %arg2: memref<3x128x128xf32, #tpu.memory_space<vmem>>, %arg3: memref<3x1x128xf32, #tpu.memory_space<vmem>>, %arg4: memref<8x128xf32, #tpu.memory_space<vmem>>) attributes {dimension_semantics = [#tpu.dimension_semantics<parallel>], iteration_bounds = array<i64: 1>, scalar_prefetch = 0 : i64, scratch_operands = 0 : i64, tpu.core_type = #tpu.core_type<tc>, window_params = [{transform_indices = @transform_0, window_bounds = array<i64: 8, 128>}, {pipeline_mode = #tpu.pipeline_mode<synchronous>, transform_indices = @transform_1, window_bounds = array<i64: 3, 128, 128>}, {pipeline_mode = #tpu.pipeline_mode<synchronous>, transform_indices = @transform_2, window_bounds = array<i64: 3, 1, 128>}, {transform_indices = @transform_3, window_bounds = array<i64: 8, 128>}]} {
    %c0 = arith.constant 0 : index
    %c0_0 = arith.constant 0 : index
    %0 = vector.load %arg1[%c0, %c0_0] : memref<8x128xf32, #tpu.memory_space<vmem>>, vector<8x128xf32>
    %c0_i32 = arith.constant 0 : i32
    %cst = arith.constant 0.000000e+00 : f32
    %1 = vector.broadcast %cst : f32 to vector<8x128xf32>
    %2 = arith.maximumf %0, %1 : vector<8x128xf32>
    %3 = arith.index_cast %c0_i32 : i32 to index
    %c0_1 = arith.constant 0 : index
    %c0_2 = arith.constant 0 : index
    %4 = vector.load %arg2[%3, %c0_1, %c0_2] : memref<3x128x128xf32, #tpu.memory_space<vmem>>, vector<1x128x128xf32>
    %5 = vector.shape_cast %4 : vector<1x128x128xf32> to vector<128x128xf32>
    %cst_3 = arith.constant dense<0.000000e+00> : vector<8x128xf32>
    %6 = tpu.matmul %2, %5, %cst_3 {dimension_numbers = #tpu.dot_dimension_numbers<[1], [0], [0], [1], [0, 0, 1, 1], [], []>} : vector<8x128xf32>, vector<128x128xf32>, vector<8x128xf32> -> vector<8x128xf32>
    %7 = arith.addf %2, %6 : vector<8x128xf32>
    %8 = arith.index_cast %c0_i32 : i32 to index
    %c0_4 = arith.constant 0 : index
    %c0_5 = arith.constant 0 : index
    %9 = vector.load %arg3[%8, %c0_4, %c0_5] : memref<3x1x128xf32, #tpu.memory_space<vmem>>, vector<1x1x128xf32>
    %10 = vector.shape_cast %9 : vector<1x1x128xf32> to vector<1x128xf32>
    %11 = vector.broadcast %10 : vector<1x128xf32> to vector<8x128xf32>
    %12 = arith.addf %7, %11 : vector<8x128xf32>
    %c1_i32 = arith.constant 1 : i32
    %cst_6 = arith.constant 0.000000e+00 : f32
    %13 = vector.broadcast %cst_6 : f32 to vector<8x128xf32>
    %14 = arith.maximumf %12, %13 : vector<8x128xf32>
    %15 = arith.index_cast %c1_i32 : i32 to index
    %c0_7 = arith.constant 0 : index
    %c0_8 = arith.constant 0 : index
    %16 = vector.load %arg2[%15, %c0_7, %c0_8] : memref<3x128x128xf32, #tpu.memory_space<vmem>>, vector<1x128x128xf32>
    %17 = vector.shape_cast %16 : vector<1x128x128xf32> to vector<128x128xf32>
    %cst_9 = arith.constant dense<0.000000e+00> : vector<8x128xf32>
    %18 = tpu.matmul %14, %17, %cst_9 {dimension_numbers = #tpu.dot_dimension_numbers<[1], [0], [0], [1], [0, 0, 1, 1], [], []>} : vector<8x128xf32>, vector<128x128xf32>, vector<8x128xf32> -> vector<8x128xf32>
    %19 = arith.addf %14, %18 : vector<8x128xf32>
    %20 = arith.index_cast %c1_i32 : i32 to index
    %c0_10 = arith.constant 0 : index
    %c0_11 = arith.constant 0 : index
    %21 = vector.load %arg3[%20, %c0_10, %c0_11] : memref<3x1x128xf32, #tpu.memory_space<vmem>>, vector<1x1x128xf32>
    %22 = vector.shape_cast %21 : vector<1x1x128xf32> to vector<1x128xf32>
    %23 = vector.broadcast %22 : vector<1x128xf32> to vector<8x128xf32>
    %24 = arith.addf %19, %23 : vector<8x128xf32>
    %c2_i32 = arith.constant 2 : i32
    %cst_12 = arith.constant 0.000000e+00 : f32
    %25 = vector.broadcast %cst_12 : f32 to vector<8x128xf32>
    %26 = arith.maximumf %24, %25 : vector<8x128xf32>
    %27 = arith.index_cast %c2_i32 : i32 to index
    %c0_13 = arith.constant 0 : index
    %c0_14 = arith.constant 0 : index
    %28 = vector.load %arg2[%27, %c0_13, %c0_14] : memref<3x128x128xf32, #tpu.memory_space<vmem>>, vector<1x128x128xf32>
    %29 = vector.shape_cast %28 : vector<1x128x128xf32> to vector<128x128xf32>
    %cst_15 = arith.constant dense<0.000000e+00> : vector<8x128xf32>
    %30 = tpu.matmul %26, %29, %cst_15 {dimension_numbers = #tpu.dot_dimension_numbers<[1], [0], [0], [1], [0, 0, 1, 1], [], []>} : vector<8x128xf32>, vector<128x128xf32>, vector<8x128xf32> -> vector<8x128xf32>
    %31 = arith.addf %26, %30 : vector<8x128xf32>
    %32 = arith.index_cast %c2_i32 : i32 to index
    %c0_16 = arith.constant 0 : index
    %c0_17 = arith.constant 0 : index
    %33 = vector.load %arg3[%32, %c0_16, %c0_17] : memref<3x1x128xf32, #tpu.memory_space<vmem>>, vector<1x1x128xf32>
    %34 = vector.shape_cast %33 : vector<1x1x128xf32> to vector<1x128xf32>
    %35 = vector.broadcast %34 : vector<1x128xf32> to vector<8x128xf32>
    %36 = arith.addf %31, %35 : vector<8x128xf32>
    %c3_i32 = arith.constant 3 : i32
    %c0_18 = arith.constant 0 : index
    %c0_19 = arith.constant 0 : index
    %37 = vector.load %arg4[%c0_18, %c0_19] : memref<8x128xf32, #tpu.memory_space<vmem>>, vector<8x128xf32>
    tpu.vector_store %arg4[%c0_18, %c0_19], %36 {strides = array<i32>} : memref<8x128xf32, #tpu.memory_space<vmem>>, vector<8x128xf32>,
    return
  }
  func.func @transform_0(%arg0: i32) -> (i32, i32) {
    %c0_i32 = arith.constant 0 : i32
    %c0_i32_0 = arith.constant 0 : i32
    return %arg0, %c0_i32 : i32, i32
  }
  func.func @transform_1(%arg0: i32) -> (i32, i32, i32) {
    %c0_i32 = arith.constant 0 : i32
    %c0_i32_0 = arith.constant 0 : i32
    %c0_i32_1 = arith.constant 0 : i32
    %c0_i32_2 = arith.constant 0 : i32
    return %c0_i32, %c0_i32_0, %c0_i32_1 : i32, i32, i32
  }
  func.func @transform_2(%arg0: i32) -> (i32, i32, i32) {
    %c0_i32 = arith.constant 0 : i32
    %c0_i32_0 = arith.constant 0 : i32
    %c0_i32_1 = arith.constant 0 : i32
    %c0_i32_2 = arith.constant 0 : i32
    return %c0_i32, %c0_i32_0, %c0_i32_1 : i32, i32, i32
  }
  func.func @transform_3(%arg0: i32) -> (i32, i32) {
    %c0_i32 = arith.constant 0 : i32
    %c0_i32_0 = arith.constant 0 : i32
    return %arg0, %c0_i32 : i32, i32
  }
}

module attributes {stable_mosaic.version = 11 : i64} {
  func.func @feat_res_kernel(%arg0: i32, %arg1: memref<8x128xf32, #tpu.memory_space<vmem>>, %arg2: memref<3x128x128xf32, #tpu.memory_space<vmem>>, %arg3: memref<3x1x128xf32, #tpu.memory_space<vmem>>, %arg4: memref<8x128xf32, #tpu.memory_space<vmem>>) attributes {dimension_semantics = [#tpu.dimension_semantics<parallel>], iteration_bounds = array<i64: 1>, scalar_prefetch = 0 : i64, scratch_operands = 0 : i64, tpu.core_type = #tpu.core_type<tc>, window_params = [{transform_indices = @transform_0, window_bounds = array<i64: 8, 128>}, {pipeline_mode = #tpu.pipeline_mode<synchronous>, transform_indices = @transform_1, window_bounds = array<i64: 3, 128, 128>}, {pipeline_mode = #tpu.pipeline_mode<synchronous>, transform_indices = @transform_2, window_bounds = array<i64: 3, 1, 128>}, {transform_indices = @transform_3, window_bounds = array<i64: 8, 128>}]} {
    %c0 = arith.constant 0 : index
    %c0_0 = arith.constant 0 : index
    %0 = vector.load %arg1[%c0, %c0_0] : memref<8x128xf32, #tpu.memory_space<vmem>>, vector<8x128xf32>
    %c0_i32 = arith.constant 0 : i32
    %cst = arith.constant 0.000000e+00 : f32
    %1 = vector.broadcast %cst : f32 to vector<8x128xf32>
    %2 = arith.maximumf %0, %1 : vector<8x128xf32>
    %3 = arith.index_cast %c0_i32 : i32 to index
    %c0_1 = arith.constant 0 : index
    %c0_2 = arith.constant 0 : index
    %4 = vector.load %arg2[%3, %c0_1, %c0_2] : memref<3x128x128xf32, #tpu.memory_space<vmem>>, vector<1x128x128xf32>
    %5 = vector.shape_cast %4 : vector<1x128x128xf32> to vector<128x128xf32>
    %cst_3 = arith.constant dense<0.000000e+00> : vector<8x128xf32>
    %6 = tpu.matmul %2, %5, %cst_3 {dimension_numbers = #tpu.dot_dimension_numbers<[1], [0], [0], [1], [0, 0, 1, 1], [], []>} : vector<8x128xf32>, vector<128x128xf32>, vector<8x128xf32> -> vector<8x128xf32>
    %7 = arith.addf %2, %6 : vector<8x128xf32>
    %8 = arith.index_cast %c0_i32 : i32 to index
    %c0_4 = arith.constant 0 : index
    %c0_5 = arith.constant 0 : index
    %9 = vector.load %arg3[%8, %c0_4, %c0_5] : memref<3x1x128xf32, #tpu.memory_space<vmem>>, vector<1x1x128xf32>
    %10 = vector.shape_cast %9 : vector<1x1x128xf32> to vector<1x128xf32>
    %11 = vector.broadcast %10 : vector<1x128xf32> to vector<8x128xf32>
    %12 = arith.addf %7, %11 : vector<8x128xf32>
    %c1_i32 = arith.constant 1 : i32
    %cst_6 = arith.constant 0.000000e+00 : f32
    %13 = vector.broadcast %cst_6 : f32 to vector<8x128xf32>
    %14 = arith.maximumf %12, %13 : vector<8x128xf32>
    %15 = arith.index_cast %c1_i32 : i32 to index
    %c0_7 = arith.constant 0 : index
    %c0_8 = arith.constant 0 : index
    %16 = vector.load %arg2[%15, %c0_7, %c0_8] : memref<3x128x128xf32, #tpu.memory_space<vmem>>, vector<1x128x128xf32>
    %17 = vector.shape_cast %16 : vector<1x128x128xf32> to vector<128x128xf32>
    %cst_9 = arith.constant dense<0.000000e+00> : vector<8x128xf32>
    %18 = tpu.matmul %14, %17, %cst_9 {dimension_numbers = #tpu.dot_dimension_numbers<[1], [0], [0], [1], [0, 0, 1, 1], [], []>} : vector<8x128xf32>, vector<128x128xf32>, vector<8x128xf32> -> vector<8x128xf32>
    %19 = arith.addf %14, %18 : vector<8x128xf32>
    %20 = arith.index_cast %c1_i32 : i32 to index
    %c0_10 = arith.constant 0 : index
    %c0_11 = arith.constant 0 : index
    %21 = vector.load %arg3[%20, %c0_10, %c0_11] : memref<3x1x128xf32, #tpu.memory_space<vmem>>, vector<1x1x128xf32>
    %22 = vector.shape_cast %21 : vector<1x1x128xf32> to vector<1x128xf32>
    %23 = vector.broadcast %22 : vector<1x128xf32> to vector<8x128xf32>
    %24 = arith.addf %19, %23 : vector<8x128xf32>
    %c2_i32 = arith.constant 2 : i32
    %cst_12 = arith.constant 0.000000e+00 : f32
    %25 = vector.broadcast %cst_12 : f32 to vector<8x128xf32>
    %26 = arith.maximumf %24, %25 : vector<8x128xf32>
    %27 = arith.index_cast %c2_i32 : i32 to index
    %c0_13 = arith.constant 0 : index
    %c0_14 = arith.constant 0 : index
    %28 = vector.load %arg2[%27, %c0_13, %c0_14] : memref<3x128x128xf32, #tpu.memory_space<vmem>>, vector<1x128x128xf32>
    %29 = vector.shape_cast %28 : vector<1x128x128xf32> to vector<128x128xf32>
    %cst_15 = arith.constant dense<0.000000e+00> : vector<8x128xf32>
    %30 = tpu.matmul %26, %29, %cst_15 {dimension_numbers = #tpu.dot_dimension_numbers<[1], [0], [0], [1], [0, 0, 1, 1], [], []>} : vector<8x128xf32>, vector<128x128xf32>, vector<8x128xf32> -> vector<8x128xf32>
    %31 = arith.addf %26, %30 : vector<8x128xf32>
    %32 = arith.index_cast %c2_i32 : i32 to index
    %c0_16 = arith.constant 0 : index
    %c0_17 = arith.constant 0 : index
    %33 = vector.load %arg3[%32, %c0_16, %c0_17] : memref<3x1x128xf32, #tpu.memory_space<vmem>>, vector<1x1x128xf32>
    %34 = vector.shape_cast %33 : vector<1x1x128xf32> to vector<1x128xf32>
    %35 = vector.broadcast %34 : vector<1x128xf32> to vector<8x128xf32>
    %36 = arith.addf %31, %35 : vector<8x128xf32>
    %c3_i32 = arith.constant 3 : i32
    %c0_18 = arith.constant 0 : index
    %c0_19 = arith.constant 0 : index
    %37 = vector.load %arg4[%c0_18, %c0_19] : memref<8x128xf32, #tpu.memory_space<vmem>>, vector<8x128xf32>
    tpu.vector_store %arg4[%c0_18, %c0_19], %36 {strides = array<i32>} : memref<8x128xf32, #tpu.memory_space<vmem>>, vector<8x128xf32>,
    return
  }
  func.func @transform_0(%arg0: i32) -> (i32, i32) {
    %c0_i32 = arith.constant 0 : i32
    %c0_i32_0 = arith.constant 0 : i32
    return %arg0, %c0_i32 : i32, i32
  }
  func.func @transform_1(%arg0: i32) -> (i32, i32, i32) {
    %c0_i32 = arith.constant 0 : i32
    %c0_i32_0 = arith.constant 0 : i32
    %c0_i32_1 = arith.constant 0 : i32
    %c0_i32_2 = arith.constant 0 : i32
    return %c0_i32, %c0_i32_0, %c0_i32_1 : i32, i32, i32
  }
  func.func @transform_2(%arg0: i32) -> (i32, i32, i32) {
    %c0_i32 = arith.constant 0 : i32
    %c0_i32_0 = arith.constant 0 : i32
    %c0_i32_1 = arith.constant 0 : i32
    %c0_i32_2 = arith.constant 0 : i32
    return %c0_i32, %c0_i32_0, %c0_i32_1 : i32, i32, i32
  }
  func.func @transform_3(%arg0: i32) -> (i32, i32) {
    %c0_i32 = arith.constant 0 : i32
    %c0_i32_0 = arith.constant 0 : i32
    return %arg0, %c0_i32 : i32, i32
  }
}

</mosaic_0001>

<bundles_post_ra>
// kernel: tpu_custom_call.1
= control target key start
LH: loop header
LB: loop body
LE: loop exit
PB: predicated region body
PF: predicated region fallthrough
CT: control target
= control target key end

     0   :  { %8 = vsyncpa [#allocation3], 0  ;;  %s366_s0 = inlined_call_operand.hbm [shape: f32[8,128], index: 0, kind: input, shape index: {}]   ;;  %s367_s1 = inlined_call_operand.hbm [shape: f32[3,128,128], index: 1, kind: input, shape index: {}]   ;;  %s368_s2 = inlined_call_operand.hbm [shape: f32[3,1,128], index: 2, kind: input, shape index: {}]   ;;  %s369_s3 = inlined_call_operand.hbm [shape: f32[8,128], index: 3, kind: output, shape index: {}]  }
   0x1   :  { %9 = vsyncpa [#allocation6], 0  ;;  %s26_s14 = sshll.u32 %s367_s1, 4  ;;  %s27_s14 = int_to_ptr.hbm [resolvable:$true] %s26_s14 }
   0x2   :  { %10 = vsyncpa [#allocation4], 0  ;;  %s326_s15 = smov [#allocation5]   ;;  %s16_s19 = sshll.u32 %s366_s0, 4  ;;  %s17_s19 = int_to_ptr.hbm [resolvable:$true] %s16_s19 }
   0x3   :  { %s28_s16 = sshll.u32 %s326_s15, 4  ;;  %s327_s20 = smov 128   ;;  %s29_s16 = int_to_ptr.vmem [resolvable:$true] %s28_s16 }
   0x4   :  { %s328_s21 = smov 8   ;;  %s329_s22 = smov [#allocation2]  }
   0x5   :  { %34 = dma.hbm_to_vmem [thread:$0]  %s27_s14, 6144, %s29_s16, [#allocation6], %s327_s20, %s327_s20, %s328_s21  }
   0x6   :  { %s18_s23 = sshll.u32 %s329_s22, 4  ;;  %s39_s26 = sshll.u32 %s368_s2, 4  ;;  %s19_s23 = int_to_ptr.vmem [resolvable:$true] %s18_s23  ;;  %s40_s26 = int_to_ptr.hbm [resolvable:$true] %s39_s26 }
   0x7   :  { %21 = dma.hbm_to_vmem [thread:$0]  %s17_s19, 128, %s19_s23, [#allocation3]  }
   0x8   :  { %s330_s1 = smov [#allocation7]   ;;  %s331_s28 = smov 16  }
   0x9   :  { %s41_s27 = sshll.u32 %s330_s1, 4  ;;  %s332_s29 = smov 1   ;;  %s42_s27 = int_to_ptr.vmem [resolvable:$true] %s41_s27 }
   0xa   :  { %47 = dma.hbm_to_vmem [thread:$0]  %s40_s26, 48, %s42_s27, [#allocation6], %s331_s28, %s331_s28, %s332_s29  }
   0xb   :  { %320 = dma.done.wait [#allocation3], 128  }
   0xc   :  { %321 = vsyncadd [#allocation3], 4294967168 }
   0xd   :  { %322 = dma.done.wait [#allocation6], 6192  }
   0xe   :  { %323 = vsyncadd [#allocation6], 4294961104  ;;  %v77_v0 = vld [vmem:[#allocation5 + $0x78] sm:$0xff]  ;;  %v76_v1 = vld [vmem:[#allocation5 + $0x70] sm:$0xff]  ;;  %s333_s0 = smov [#allocation8]   ;;  %s202_s5 = sshll.u32 %s369_s3, 4  ;;  %s203_s5 = int_to_ptr.hbm [resolvable:$true] %s202_s5 }
   0xf   :  { %78 = vmatpush.msra.mxu0 %v77_v0  ;;  %v75_v2 = vld [vmem:[#allocation5 + $0x68] sm:$0xff]  ;;  %v74_v3 = vld [vmem:[#allocation5 + $0x60] sm:$0xff]  ;;  %v121_v4 = vld [vmem:[#allocation5 + $0xf8] sm:$0xff]  ;;  %s200_s2 = sshll.u32 %s333_s0, 4  ;;  %s201_s2 = int_to_ptr.vmem [resolvable:$true] %s200_s2 }
  0x10   :  { %v73_v5 = vld [vmem:[#allocation5 + $0x58] sm:$0xff]  ;;  %122 = vmatpush.msra.mxu1 %v121_v4  ;;  %v120_v6 = vld [vmem:[#allocation5 + $0xf0] sm:$0xff]  ;;  %v119_v7 = vld [vmem:[#allocation5 + $0xe8] sm:$0xff] }
  0x11   :  { %79 = vmatpush.msra.mxu0 %v76_v1  ;;  %v72_v8 = vld [vmem:[#allocation5 + $0x50] sm:$0xff]  ;;  %v118_v9 = vld [vmem:[#allocation5 + $0xe0] sm:$0xff]  ;;  %v71_v10 = vld [vmem:[#allocation5 + $0x48] sm:$0xff] }
  0x12   :  { %123 = vmatpush.msra.mxu1 %v120_v6  ;;  %v117_v11 = vld [vmem:[#allocation5 + $0xd8] sm:$0xff]  ;;  %v70_v12 = vld [vmem:[#allocation5 + $0x40] sm:$0xff]  ;;  %v116_v13 = vld [vmem:[#allocation5 + $0xd0] sm:$0xff] }
  0x13   :  { %80 = vmatpush.msra.mxu0 %v75_v2  ;;  %v69_v14 = vld [vmem:[#allocation5 + $0x38] sm:$0xff]  ;;  %v115_v15 = vld [vmem:[#allocation5 + $0xc8] sm:$0xff]  ;;  %v68_v16 = vld [vmem:[#allocation5 + $0x30] sm:$0xff] }
  0x14   :  { %124 = vmatpush.msra.mxu1 %v119_v7  ;;  %v114_v17 = vld [vmem:[#allocation5 + $0xc0] sm:$0xff]  ;;  %v67_v18 = vld [vmem:[#allocation5 + $0x28] sm:$0xff]  ;;  %v113_v19 = vld [vmem:[#allocation5 + $0xb8] sm:$0xff] }
  0x15   :  { %81 = vmatpush.msra.mxu0 %v74_v3  ;;  %v66_v20 = vld [vmem:[#allocation5 + $0x20] sm:$0xff]  ;;  %v112_v21 = vld [vmem:[#allocation5 + $0xb0] sm:$0xff]  ;;  %v65_v22 = vld [vmem:[#allocation5 + $0x18] sm:$0xff] }
  0x16   :  { %125 = vmatpush.msra.mxu1 %v118_v9  ;;  %v111_v23 = vld [vmem:[#allocation5 + $0xa8] sm:$0xff]  ;;  %v64_v24 = vld [vmem:[#allocation5 + $0x10] sm:$0xff]  ;;  %v60_v25 = vld [vmem:[#allocation2] sm:$0xff] }
  0x17   :  { %82 = vmatpush.msra.mxu0 %v73_v5  ;;  %v110_v26 = vld [vmem:[#allocation5 + $0xa0] sm:$0xff]  ;;  %v63_v27 = vld [vmem:[#allocation5 + $0x8] sm:$0xff]  ;;  %v61_v29 = vmax.f32 %v60_v25, 0.0  ;;  %v109_v30 = vld [vmem:[#allocation5 + $0x98] sm:$0xff] }
  0x18   :  { %126 = vmatpush.msra.mxu1 %v117_v11  ;;  %v62_v28 = vld [vmem:[#allocation5] sm:$0xff]  ;;  %v108_v31 = vld [vmem:[#allocation5 + $0x90] sm:$0xff]  ;;  %v107_v32 = vld [vmem:[#allocation5 + $0x88] sm:$0xff] }
  0x19   :  { %83 = vmatpush.msra.mxu0 %v72_v8  ;;  %v106_v33 = vld [vmem:[#allocation5 + $0x80] sm:$0xff]  ;;  %v166_v34 = vld [vmem:[#allocation5 + $0x178] sm:$0xff]  ;;  %v165_v35 = vld [vmem:[#allocation5 + $0x170] sm:$0xff] }
  0x1a   :  { %127 = vmatpush.msra.mxu1 %v116_v13  ;;  %167 = vmatpush.msra.mxu2 %v166_v34  ;;  %v164_v36 = vld [vmem:[#allocation5 + $0x168] sm:$0xff]  ;;  %v163_v37 = vld [vmem:[#allocation5 + $0x160] sm:$0xff]  ;;  %v162_v38 = vld [vmem:[#allocation5 + $0x158] sm:$0xff] }
  0x1b   :  { %84 = vmatpush.msra.mxu0 %v71_v10  ;;  %v161_v39 = vld [vmem:[#allocation5 + $0x150] sm:$0xff]  ;;  %v160_v40 = vld [vmem:[#allocation5 + $0x148] sm:$0xff]  ;;  %v159_v41 = vld [vmem:[#allocation5 + $0x140] sm:$0xff] }
  0x1c   :  { %128 = vmatpush.msra.mxu1 %v115_v15  ;;  %168 = vmatpush.msra.mxu2 %v165_v35  ;;  %v158_v42 = vld [vmem:[#allocation5 + $0x138] sm:$0xff]  ;;  %v157_v43 = vld [vmem:[#allocation5 + $0x130] sm:$0xff]  ;;  %v156_v44 = vld [vmem:[#allocation5 + $0x128] sm:$0xff] }
  0x1d   :  { %85 = vmatpush.msra.mxu0 %v70_v12  ;;  %v155_v45 = vld [vmem:[#allocation5 + $0x120] sm:$0xff]  ;;  %v154_v51 = vld [vmem:[#allocation5 + $0x118] sm:$0xff]  ;;  %v153_v52 = vld [vmem:[#allocation5 + $0x110] sm:$0xff] }
  0x1e   :  { %129 = vmatpush.msra.mxu1 %v114_v17  ;;  %169 = vmatpush.msra.mxu2 %v164_v36  ;;  %v221_v46 = vld [vmem:[#allocation7] ss:$0 sm:$0xff]  ;;  %v152_v53 = vld [vmem:[#allocation5 + $0x108] sm:$0xff]  ;;  %v222_v55 = vld [vmem:[#allocation7 + $0x1] ss:$0 sm:$0xff] }
  0x1f   :  { %86 = vmatpush.msra.mxu0 %v69_v14  ;;  %v151_v54 = vld [vmem:[#allocation5 + $0x100] sm:$0xff] }
  0x20   :  { %130 = vmatpush.msra.mxu1 %v113_v19  ;;  %170 = vmatpush.msra.mxu2 %v163_v37  ;;  %v223_v60 = vld [vmem:[#allocation7 + $0x2] ss:$0 sm:$0xff] }
  0x21   :  { %87 = vmatpush.msra.mxu0 %v68_v16 }
  0x22   :  { %131 = vmatpush.msra.mxu1 %v112_v21  ;;  %171 = vmatpush.msra.mxu2 %v162_v38 }
  0x23   :  { %88 = vmatpush.msra.mxu0 %v67_v18 }
  0x24   :  { %132 = vmatpush.msra.mxu1 %v111_v23  ;;  %172 = vmatpush.msra.mxu2 %v161_v39 }
  0x25   :  { %89 = vmatpush.msra.mxu0 %v66_v20 }
  0x26   :  { %133 = vmatpush.msra.mxu1 %v110_v26  ;;  %173 = vmatpush.msra.mxu2 %v160_v40 }
  0x27   :  { %90 = vmatpush.msra.mxu0 %v65_v22 }
  0x28   :  { %134 = vmatpush.msra.mxu1 %v109_v30  ;;  %174 = vmatpush.msra.mxu2 %v159_v41 }
  0x29   :  { %91 = vmatpush.msra.mxu0 %v64_v24 }
  0x2a   :  { %135 = vmatpush.msra.mxu1 %v108_v31  ;;  %175 = vmatpush.msra.mxu2 %v158_v42 }
  0x2b   :  { %92 = vmatpush.msra.mxu0 %v63_v27 }
  0x2c   :  { %136 = vmatpush.msra.mxu1 %v107_v32  ;;  %176 = vmatpush.msra.mxu2 %v157_v43 }
  0x2d   :  { %93 = vmatpush.msra.mxu0 %v62_v28 }
  0x2e   :  { %94 = vmatmul.f32.vlgmr.msra.gmra.mxu0 %v61_v29  ;;  %137 = vmatpush.msra.mxu1 %v106_v33 }
  0x2f   :  { %177 = vmatpush.msra.mxu2 %v156_v44 }
  0x31   :  { %178 = vmatpush.msra.mxu2 %v155_v45 }
  0x33   :  { %179 = vmatpush.msra.mxu2 %v154_v51 }
  0x35   :  { %180 = vmatpush.msra.mxu2 %v153_v52 }
  0x37   :  { %181 = vmatpush.msra.mxu2 %v152_v53 }
  0x39   :  { %182 = vmatpush.msra.mxu2 %v151_v54 }
  0xab   :  { %v95_v47 = vpop.f32.mrf.mxu0 }
  0xac   :  { %v98_v48 = vadd.f32 %v95_v47, %v61_v29 }
  0xae   :  { %v103_v49 = vadd.f32 %v221_v46, %v98_v48 }
  0xb0   :  { %v104_v50 = vmax.f32 %v103_v49, 0.0 }
  0xb2   :  { %138 = vmatmul.f32.vlgmr.msra.gmra.mxu1 %v104_v50 }
 0x12f   :  { %v139_v56 = vpop.f32.mrf.mxu1 }
 0x130   :  { %v142_v57 = vadd.f32 %v139_v56, %v104_v50 }
 0x132   :  { %v148_v58 = vadd.f32 %v222_v55, %v142_v57 }
 0x134   :  { %v149_v59 = vmax.f32 %v148_v58, 0.0 }
 0x136   :  { %183 = vmatmul.f32.vlgmr.msra.gmra.mxu2 %v149_v59 }
 0x1b9   :  { %v184_v61 = vpop.f32.mrf.mxu2 }
 0x1ba   :  { %v187_v62 = vadd.f32 %v184_v61, %v149_v59 }
 0x1bc   :  { %v193_v63 = vadd.f32 %v223_v60, %v187_v62 }
 0x1be   :  { %194 = vst [vmem:[#allocation8] sm:$0xff] %v193_v63 }
 0x1bf   :  { %205 = dma.vmem_to_hbm [thread:$0]  %s201_s2, 128, %s203_s5, [#allocation4]  }
 0x1c0   :  { %324 = dma.done.wait [#allocation4], 128  }
 0x1c1   :  { %325 = vsyncadd [#allocation4], 4294967168 }
 0x1c2   :  { %210 = vsyncpa [#allocation3], 1 }
 0x1c3   :  { %211 = vsyncpa [#allocation6], 1 }
 0x1c4   :  { %212 = vsyncpa [#allocation4], 1 }

// kernel: tpu_custom_call.1
= control target key start
LH: loop header
LB: loop body
LE: loop exit
PB: predicated region body
PF: predicated region fallthrough
CT: control target
= control target key end

     0   :  { %8 = vsyncpa [#allocation3], 0  ;;  %s366_s0 = inlined_call_operand.hbm [shape: f32[8,128], index: 0, kind: input, shape index: {}]   ;;  %s367_s1 = inlined_call_operand.hbm [shape: f32[3,128,128], index: 1, kind: input, shape index: {}]   ;;  %s368_s2 = inlined_call_operand.hbm [shape: f32[3,1,128], index: 2, kind: input, shape index: {}]   ;;  %s369_s3 = inlined_call_operand.hbm [shape: f32[8,128], index: 3, kind: output, shape index: {}]  }
   0x1   :  { %9 = vsyncpa [#allocation6], 0  ;;  %s26_s14 = sshll.u32 %s367_s1, 4  ;;  %s27_s14 = int_to_ptr.hbm [resolvable:$true] %s26_s14 }
   0x2   :  { %10 = vsyncpa [#allocation4], 0  ;;  %s326_s15 = smov [#allocation5]   ;;  %s16_s19 = sshll.u32 %s366_s0, 4  ;;  %s17_s19 = int_to_ptr.hbm [resolvable:$true] %s16_s19 }
   0x3   :  { %s28_s16 = sshll.u32 %s326_s15, 4  ;;  %s327_s20 = smov 128   ;;  %s29_s16 = int_to_ptr.vmem [resolvable:$true] %s28_s16 }
   0x4   :  { %s328_s21 = smov 8   ;;  %s329_s22 = smov [#allocation2]  }
   0x5   :  { %34 = dma.hbm_to_vmem [thread:$0]  %s27_s14, 6144, %s29_s16, [#allocation6], %s327_s20, %s327_s20, %s328_s21  }
   0x6   :  { %s18_s23 = sshll.u32 %s329_s22, 4  ;;  %s39_s26 = sshll.u32 %s368_s2, 4  ;;  %s19_s23 = int_to_ptr.vmem [resolvable:$true] %s18_s23  ;;  %s40_s26 = int_to_ptr.hbm [resolvable:$true] %s39_s26 }
   0x7   :  { %21 = dma.hbm_to_vmem [thread:$0]  %s17_s19, 128, %s19_s23, [#allocation3]  }
   0x8   :  { %s330_s1 = smov [#allocation7]   ;;  %s331_s28 = smov 16  }
   0x9   :  { %s41_s27 = sshll.u32 %s330_s1, 4  ;;  %s332_s29 = smov 1   ;;  %s42_s27 = int_to_ptr.vmem [resolvable:$true] %s41_s27 }
   0xa   :  { %47 = dma.hbm_to_vmem [thread:$0]  %s40_s26, 48, %s42_s27, [#allocation6], %s331_s28, %s331_s28, %s332_s29  }
   0xb   :  { %320 = dma.done.wait [#allocation3], 128  }
   0xc   :  { %321 = vsyncadd [#allocation3], 4294967168 }
   0xd   :  { %322 = dma.done.wait [#allocation6], 6192  }
   0xe   :  { %323 = vsyncadd [#allocation6], 4294961104  ;;  %v77_v0 = vld [vmem:[#allocation5 + $0x78] sm:$0xff]  ;;  %v76_v1 = vld [vmem:[#allocation5 + $0x70] sm:$0xff]  ;;  %s333_s0 = smov [#allocation8]   ;;  %s202_s5 = sshll.u32 %s369_s3, 4  ;;  %s203_s5 = int_to_ptr.hbm [resolvable:$true] %s202_s5 }
   0xf   :  { %78 = vmatpush.msra.mxu0 %v77_v0  ;;  %v75_v2 = vld [vmem:[#allocation5 + $0x68] sm:$0xff]  ;;  %v74_v3 = vld [vmem:[#allocation5 + $0x60] sm:$0xff]  ;;  %v121_v4 = vld [vmem:[#allocation5 + $0xf8] sm:$0xff]  ;;  %s200_s2 = sshll.u32 %s333_s0, 4  ;;  %s201_s2 = int_to_ptr.vmem [resolvable:$true] %s200_s2 }
  0x10   :  { %v73_v5 = vld [vmem:[#allocation5 + $0x58] sm:$0xff]  ;;  %122 = vmatpush.msra.mxu1 %v121_v4  ;;  %v120_v6 = vld [vmem:[#allocation5 + $0xf0] sm:$0xff]  ;;  %v119_v7 = vld [vmem:[#allocation5 + $0xe8] sm:$0xff] }
  0x11   :  { %79 = vmatpush.msra.mxu0 %v76_v1  ;;  %v72_v8 = vld [vmem:[#allocation5 + $0x50] sm:$0xff]  ;;  %v118_v9 = vld [vmem:[#allocation5 + $0xe0] sm:$0xff]  ;;  %v71_v10 = vld [vmem:[#allocation5 + $0x48] sm:$0xff] }
  0x12   :  { %123 = vmatpush.msra.mxu1 %v120_v6  ;;  %v117_v11 = vld [vmem:[#allocation5 + $0xd8] sm:$0xff]  ;;  %v70_v12 = vld [vmem:[#allocation5 + $0x40] sm:$0xff]  ;;  %v116_v13 = vld [vmem:[#allocation5 + $0xd0] sm:$0xff] }
  0x13   :  { %80 = vmatpush.msra.mxu0 %v75_v2  ;;  %v69_v14 = vld [vmem:[#allocation5 + $0x38] sm:$0xff]  ;;  %v115_v15 = vld [vmem:[#allocation5 + $0xc8] sm:$0xff]  ;;  %v68_v16 = vld [vmem:[#allocation5 + $0x30] sm:$0xff] }
  0x14   :  { %124 = vmatpush.msra.mxu1 %v119_v7  ;;  %v114_v17 = vld [vmem:[#allocation5 + $0xc0] sm:$0xff]  ;;  %v67_v18 = vld [vmem:[#allocation5 + $0x28] sm:$0xff]  ;;  %v113_v19 = vld [vmem:[#allocation5 + $0xb8] sm:$0xff] }
  0x15   :  { %81 = vmatpush.msra.mxu0 %v74_v3  ;;  %v66_v20 = vld [vmem:[#allocation5 + $0x20] sm:$0xff]  ;;  %v112_v21 = vld [vmem:[#allocation5 + $0xb0] sm:$0xff]  ;;  %v65_v22 = vld [vmem:[#allocation5 + $0x18] sm:$0xff] }
  0x16   :  { %125 = vmatpush.msra.mxu1 %v118_v9  ;;  %v111_v23 = vld [vmem:[#allocation5 + $0xa8] sm:$0xff]  ;;  %v64_v24 = vld [vmem:[#allocation5 + $0x10] sm:$0xff]  ;;  %v60_v25 = vld [vmem:[#allocation2] sm:$0xff] }
  0x17   :  { %82 = vmatpush.msra.mxu0 %v73_v5  ;;  %v110_v26 = vld [vmem:[#allocation5 + $0xa0] sm:$0xff]  ;;  %v63_v27 = vld [vmem:[#allocation5 + $0x8] sm:$0xff]  ;;  %v61_v29 = vmax.f32 %v60_v25, 0.0  ;;  %v109_v30 = vld [vmem:[#allocation5 + $0x98] sm:$0xff] }
  0x18   :  { %126 = vmatpush.msra.mxu1 %v117_v11  ;;  %v62_v28 = vld [vmem:[#allocation5] sm:$0xff]  ;;  %v108_v31 = vld [vmem:[#allocation5 + $0x90] sm:$0xff]  ;;  %v107_v32 = vld [vmem:[#allocation5 + $0x88] sm:$0xff] }
  0x19   :  { %83 = vmatpush.msra.mxu0 %v72_v8  ;;  %v106_v33 = vld [vmem:[#allocation5 + $0x80] sm:$0xff]  ;;  %v166_v34 = vld [vmem:[#allocation5 + $0x178] sm:$0xff]  ;;  %v165_v35 = vld [vmem:[#allocation5 + $0x170] sm:$0xff] }
  0x1a   :  { %127 = vmatpush.msra.mxu1 %v116_v13  ;;  %167 = vmatpush.msra.mxu2 %v166_v34  ;;  %v164_v36 = vld [vmem:[#allocation5 + $0x168] sm:$0xff]  ;;  %v163_v37 = vld [vmem:[#allocation5 + $0x160] sm:$0xff]  ;;  %v162_v38 = vld [vmem:[#allocation5 + $0x158] sm:$0xff] }
  0x1b   :  { %84 = vmatpush.msra.mxu0 %v71_v10  ;;  %v161_v39 = vld [vmem:[#allocation5 + $0x150] sm:$0xff]  ;;  %v160_v40 = vld [vmem:[#allocation5 + $0x148] sm:$0xff]  ;;  %v159_v41 = vld [vmem:[#allocation5 + $0x140] sm:$0xff] }
  0x1c   :  { %128 = vmatpush.msra.mxu1 %v115_v15  ;;  %168 = vmatpush.msra.mxu2 %v165_v35  ;;  %v158_v42 = vld [vmem:[#allocation5 + $0x138] sm:$0xff]  ;;  %v157_v43 = vld [vmem:[#allocation5 + $0x130] sm:$0xff]  ;;  %v156_v44 = vld [vmem:[#allocation5 + $0x128] sm:$0xff] }
  0x1d   :  { %85 = vmatpush.msra.mxu0 %v70_v12  ;;  %v155_v45 = vld [vmem:[#allocation5 + $0x120] sm:$0xff]  ;;  %v154_v51 = vld [vmem:[#allocation5 + $0x118] sm:$0xff]  ;;  %v153_v52 = vld [vmem:[#allocation5 + $0x110] sm:$0xff] }
  0x1e   :  { %129 = vmatpush.msra.mxu1 %v114_v17  ;;  %169 = vmatpush.msra.mxu2 %v164_v36  ;;  %v221_v46 = vld [vmem:[#allocation7] ss:$0 sm:$0xff]  ;;  %v152_v53 = vld [vmem:[#allocation5 + $0x108] sm:$0xff]  ;;  %v222_v55 = vld [vmem:[#allocation7 + $0x1] ss:$0 sm:$0xff] }
  0x1f   :  { %86 = vmatpush.msra.mxu0 %v69_v14  ;;  %v151_v54 = vld [vmem:[#allocation5 + $0x100] sm:$0xff] }
  0x20   :  { %130 = vmatpush.msra.mxu1 %v113_v19  ;;  %170 = vmatpush.msra.mxu2 %v163_v37  ;;  %v223_v60 = vld [vmem:[#allocation7 + $0x2] ss:$0 sm:$0xff] }
  0x21   :  { %87 = vmatpush.msra.mxu0 %v68_v16 }
  0x22   :  { %131 = vmatpush.msra.mxu1 %v112_v21  ;;  %171 = vmatpush.msra.mxu2 %v162_v38 }
  0x23   :  { %88 = vmatpush.msra.mxu0 %v67_v18 }
  0x24   :  { %132 = vmatpush.msra.mxu1 %v111_v23  ;;  %172 = vmatpush.msra.mxu2 %v161_v39 }
  0x25   :  { %89 = vmatpush.msra.mxu0 %v66_v20 }
  0x26   :  { %133 = vmatpush.msra.mxu1 %v110_v26  ;;  %173 = vmatpush.msra.mxu2 %v160_v40 }
  0x27   :  { %90 = vmatpush.msra.mxu0 %v65_v22 }
  0x28   :  { %134 = vmatpush.msra.mxu1 %v109_v30  ;;  %174 = vmatpush.msra.mxu2 %v159_v41 }
  0x29   :  { %91 = vmatpush.msra.mxu0 %v64_v24 }
  0x2a   :  { %135 = vmatpush.msra.mxu1 %v108_v31  ;;  %175 = vmatpush.msra.mxu2 %v158_v42 }
  0x2b   :  { %92 = vmatpush.msra.mxu0 %v63_v27 }
  0x2c   :  { %136 = vmatpush.msra.mxu1 %v107_v32  ;;  %176 = vmatpush.msra.mxu2 %v157_v43 }
  0x2d   :  { %93 = vmatpush.msra.mxu0 %v62_v28 }
  0x2e   :  { %94 = vmatmul.f32.vlgmr.msra.gmra.mxu0 %v61_v29  ;;  %137 = vmatpush.msra.mxu1 %v106_v33 }
  0x2f   :  { %177 = vmatpush.msra.mxu2 %v156_v44 }
  0x31   :  { %178 = vmatpush.msra.mxu2 %v155_v45 }
  0x33   :  { %179 = vmatpush.msra.mxu2 %v154_v51 }
  0x35   :  { %180 = vmatpush.msra.mxu2 %v153_v52 }
  0x37   :  { %181 = vmatpush.msra.mxu2 %v152_v53 }
  0x39   :  { %182 = vmatpush.msra.mxu2 %v151_v54 }
  0xab   :  { %v95_v47 = vpop.f32.mrf.mxu0 }
  0xac   :  { %v98_v48 = vadd.f32 %v95_v47, %v61_v29 }
  0xae   :  { %v103_v49 = vadd.f32 %v221_v46, %v98_v48 }
  0xb0   :  { %v104_v50 = vmax.f32 %v103_v49, 0.0 }
  0xb2   :  { %138 = vmatmul.f32.vlgmr.msra.gmra.mxu1 %v104_v50 }
 0x12f   :  { %v139_v56 = vpop.f32.mrf.mxu1 }
 0x130   :  { %v142_v57 = vadd.f32 %v139_v56, %v104_v50 }
 0x132   :  { %v148_v58 = vadd.f32 %v222_v55, %v142_v57 }
 0x134   :  { %v149_v59 = vmax.f32 %v148_v58, 0.0 }
 0x136   :  { %183 = vmatmul.f32.vlgmr.msra.gmra.mxu2 %v149_v59 }
 0x1b9   :  { %v184_v61 = vpop.f32.mrf.mxu2 }
 0x1ba   :  { %v187_v62 = vadd.f32 %v184_v61, %v149_v59 }
 0x1bc   :  { %v193_v63 = vadd.f32 %v223_v60, %v187_v62 }
 0x1be   :  { %194 = vst [vmem:[#allocation8] sm:$0xff] %v193_v63 }
 0x1bf   :  { %205 = dma.vmem_to_hbm [thread:$0]  %s201_s2, 128, %s203_s5, [#allocation4]  }
 0x1c0   :  { %324 = dma.done.wait [#allocation4], 128  }
 0x1c1   :  { %325 = vsyncadd [#allocation4], 4294967168 }
 0x1c2   :  { %210 = vsyncpa [#allocation3], 1 }
 0x1c3   :  { %211 = vsyncpa [#allocation6], 1 }
 0x1c4   :  { %212 = vsyncpa [#allocation4], 1 }

</bundles_post_ra>
